<compile_context>
chip_gen: v7x
topology: tpu7x:2x2x1
jax: 0.10.0
libtpu: 0.0.40
codegen_flags: <defaults>
</compile_context>

<pallas_src>
import functools
import math
from typing import NamedTuple

import jax
import jax.numpy as jnp
from jax.experimental import pallas as pl
from jax.experimental.pallas import tpu as pltpu


def _round_up(x: int, m: int) -> int:
    return ((x + m - 1) // m) * m


class GegluParams(NamedTuple):
    w_packed: jax.Array   # (dim_in_pad, n_tiles * 2 * tn), compute dtype (bf16)
    b_packed: jax.Array   # (1, n_tiles * 2 * tn), float32
    dim_in: int
    dim_out: int
    dim_in_pad: int
    dim_out_pad: int
    tn: int
    tk: int


def pack_geglu_params(weight, bias, *, tn=256, tk=512,
                      compute_dtype=jnp.bfloat16) -> GegluParams:
    """One-time (init-time) weight prep.

    weight: (2*dim_out, dim_in)  -- nn.Linear convention (out_features, in_features)
    bias:   (2*dim_out,)

    Splits into hidden/gate halves, transposes to (dim_in, dim_out), pads to
    tile multiples and interleaves per N-tile as [h_tile_j | g_tile_j] so the
    kernel can run a single fused MXU matmul per (M, N, K) grid step.
    Do NOT call this per forward pass — it is the hoisted weight transform.
    """
    two_dim_out, dim_in = weight.shape
    dim_out = two_dim_out // 2

    # Tile sizes: lane-dense multiples of 128, capped to (padded) problem dims.
    tn = min(tn, _round_up(dim_out, 128))
    tk = min(tk, _round_up(dim_in, 128))
    dim_out_pad = _round_up(dim_out, tn)
    dim_in_pad = _round_up(dim_in, tk)
    nj = dim_out_pad // tn

    w_h = weight[:dim_out, :].T          # (dim_in, dim_out)
    w_g = weight[dim_out:, :].T          # (dim_in, dim_out)
    pad_w = ((0, dim_in_pad - dim_in), (0, dim_out_pad - dim_out))
    w_h = jnp.pad(w_h, pad_w)
    w_g = jnp.pad(w_g, pad_w)

    # (dim_in_pad, nj, 2, tn): per N-tile j, columns are [h_tile_j | g_tile_j].
    w_packed = jnp.stack(
        [w_h.reshape(dim_in_pad, nj, tn), w_g.reshape(dim_in_pad, nj, tn)],
        axis=2,
    ).reshape(dim_in_pad, nj * 2 * tn).astype(compute_dtype)

    b_h = jnp.pad(bias[:dim_out], (0, dim_out_pad - dim_out))
    b_g = jnp.pad(bias[dim_out:], (0, dim_out_pad - dim_out))
    b_packed = jnp.stack(
        [b_h.reshape(nj, tn), b_g.reshape(nj, tn)], axis=1
    ).reshape(1, nj * 2 * tn).astype(jnp.float32)

    return GegluParams(w_packed, b_packed, dim_in, dim_out,
                       dim_in_pad, dim_out_pad, tn, tk)


def _geglu_kernel(x_ref, w_ref, b_ref, o_ref, acc_ref, *, tn):
    # x_ref : (tm, tk)        tile of flattened inputs (compute dtype)
    # w_ref : (tk, 2*tn)      packed [h_tile | g_tile] weight block
    # b_ref : (1, 2*tn)       packed [h_bias | g_bias] block (f32)
    # o_ref : (tm, tn)
    # acc_ref: (tm, 2*tn) f32 accumulator, resident across the K grid axis
    k = pl.program_id(2)

    @pl.when(k == 0)
    def _init():
        acc_ref[...] = jnp.zeros_like(acc_ref)

    # Single fused MXU matmul producing [h | g] for this (M, N) tile.
    acc_ref[...] += jnp.dot(x_ref[...], w_ref[...],
                            preferred_element_type=jnp.float32)

    @pl.when(k == pl.num_programs(2) - 1)
    def _finalize():
        hg = acc_ref[...] + b_ref[...]       # f32 bias add
        h = hg[:, :tn]                       # static, 128-aligned slices
        g = hg[:, tn:]
        # Exact (erf) GELU in f32, matching F.gelu default.
        gelu_g = 0.5 * g * (1.0 + jax.lax.erf(g * (1.0 / math.sqrt(2.0))))
        o_ref[...] = (h * gelu_g).astype(o_ref.dtype)


def geglu(hidden_states, params: GegluParams, *, tm=256):
    """GEGLU forward on pre-packed params.

    hidden_states: (..., dim_in)
    returns (..., dim_out)
    """
    *lead, dim_in = hidden_states.shape
    assert dim_in == params.dim_in, "dim_in mismatch with packed params"
    out_dtype = hidden_states.dtype
    compute_dtype = params.w_packed.dtype

    x2d = hidden_states.reshape(-1, dim_in).astype(compute_dtype)
    M = x2d.shape[0]

    # Cap the M tile to the (sublane-rounded) problem size; pad M instead of
    # asserting divisibility.
    tm = min(tm, _round_up(M, 8))
    M_pad = _round_up(M, tm)
    if M_pad != M or params.dim_in_pad != dim_in:
        x2d = jnp.pad(x2d, ((0, M_pad - M), (0, params.dim_in_pad - dim_in)))

    tn, tk = params.tn, params.tk
    nj = params.dim_out_pad // tn
    grid = (M_pad // tm, nj, params.dim_in_pad // tk)

    out2d = pl.pallas_call(
        functools.partial(_geglu_kernel, tn=tn),
        out_shape=jax.ShapeDtypeStruct((M_pad, params.dim_out_pad), out_dtype),
        grid_spec=pltpu.PrefetchScalarGridSpec(
            num_scalar_prefetch=0,
            grid=grid,
            in_specs=[
                pl.BlockSpec((tm, tk), lambda i, j, k: (i, k)),        # x
                pl.BlockSpec((tk, 2 * tn), lambda i, j, k: (k, j)),    # packed W
                pl.BlockSpec((1, 2 * tn), lambda i, j, k: (0, j)),     # packed b
            ],
            out_specs=pl.BlockSpec((tm, tn), lambda i, j, k: (i, j)),
            scratch_shapes=[pltpu.VMEM((tm, 2 * tn), jnp.float32)],
        ),
        compiler_params=pltpu.CompilerParams(
            # M and N are embarrassingly parallel (megacore-shardable);
            # K is the reduction axis and must stay last / "arbitrary".
            dimension_semantics=("parallel", "parallel", "arbitrary"),
        ),
    )(x2d, params.w_packed, params.b_packed)

    out2d = out2d[:M, :params.dim_out]
    return out2d.reshape(*lead, params.dim_out)


def _geglu_reference(hidden_states, weight, bias):
    proj = hidden_states @ weight.T + bias
    dim_out = weight.shape[0] // 2
    h, g = proj[..., :dim_out], proj[..., dim_out:]
    gelu_g = 0.5 * g * (1.0 + jax.lax.erf(g / math.sqrt(2.0)))
    return h * gelu_g


if __name__ == "__main__":
    batch, seq, dim_in, dim_out = 2, 8, 32, 32

    key = jax.random.PRNGKey(0)
    kx, kw, kb = jax.random.split(key, 3)

    x = jax.random.normal(kx, (batch, seq, dim_in), dtype=jnp.float32)
    # Deterministic nn.Linear-style init (uniform in +/- 1/sqrt(dim_in)).
    bound = 1.0 / math.sqrt(dim_in)
    weight = jax.random.uniform(kw, (2 * dim_out, dim_in),
                                minval=-bound, maxval=bound, dtype=jnp.float32)
    bias = jax.random.uniform(kb, (2 * dim_out,),
                              minval=-bound, maxval=bound, dtype=jnp.float32)

    # One-time (init-time) weight packing, then the hot-path forward.
    params = pack_geglu_params(weight, bias)
    out = geglu(x, params)
    out = jax.block_until_ready(out)

    ref = _geglu_reference(x, weight, bias)
    assert out.shape == (batch, seq, dim_out)
    # Matmul runs with bf16 inputs (f32 accumulation), so compare against the
    # f32 reference with a correspondingly looser tolerance.
    assert jnp.allclose(out, ref, atol=5e-2, rtol=5e-2), "mismatch vs reference"

    print("KERNEL_OK")
</pallas_src>

<mosaic_0001>
module attributes {stable_mosaic.version = 11 : i64} {
  func.func @_geglu_kernel(%arg0: i32, %arg1: i32, %arg2: i32, %arg3: memref<16x128xbf16, #tpu.memory_space<vmem>>, %arg4: memref<128x256xbf16, #tpu.memory_space<vmem>>, %arg5: memref<1x256xf32, #tpu.memory_space<vmem>>, %arg6: memref<16x128xf32, #tpu.memory_space<vmem>>, %arg7: memref<16x256xf32, #tpu.memory_space<vmem>>) attributes {dimension_semantics = [#tpu.dimension_semantics<parallel>, #tpu.dimension_semantics<parallel>, #tpu.dimension_semantics<arbitrary>], iteration_bounds = array<i64: 1, 1, 1>, scalar_prefetch = 0 : i64, scratch_operands = 1 : i64, tpu.core_type = #tpu.core_type<tc>, window_params = [{transform_indices = @transform_0, window_bounds = array<i64: 16, 128>}, {transform_indices = @transform_1, window_bounds = array<i64: 128, 256>}, {transform_indices = @transform_2, window_bounds = array<i64: 1, 256>}, {transform_indices = @transform_3, window_bounds = array<i64: 16, 128>}]} {
    %c0_i32 = arith.constant 0 : i32
    %0 = arith.cmpi eq, %arg2, %c0_i32 : i32
    %1 = arith.extui %0 : i1 to i32
    %c0_i32_0 = arith.constant 0 : i32
    %2 = arith.cmpi ne, %1, %c0_i32_0 : i32
    scf.if %2 {
      %cst_10 = arith.constant 0.000000e+00 : f32
      %12 = vector.broadcast %cst_10 : f32 to vector<16x256xf32>
      %c0_11 = arith.constant 0 : index
      %c0_12 = arith.constant 0 : index
      %13 = vector.load %arg7[%c0_11, %c0_12] : memref<16x256xf32, #tpu.memory_space<vmem>>, vector<16x256xf32>
      tpu.vector_store %arg7[%c0_11, %c0_12], %12 {strides = array<i32>} : memref<16x256xf32, #tpu.memory_space<vmem>>, vector<16x256xf32>,
    } else {
    }
    %c0 = arith.constant 0 : index
    %c0_1 = arith.constant 0 : index
    %3 = vector.load %arg7[%c0, %c0_1] : memref<16x256xf32, #tpu.memory_space<vmem>>, vector<16x256xf32>
    %c0_2 = arith.constant 0 : index
    %c0_3 = arith.constant 0 : index
    %4 = vector.load %arg3[%c0_2, %c0_3] : memref<16x128xbf16, #tpu.memory_space<vmem>>, vector<16x128xbf16>
    %c0_4 = arith.constant 0 : index
    %c0_5 = arith.constant 0 : index
    %5 = vector.load %arg4[%c0_4, %c0_5] : memref<128x256xbf16, #tpu.memory_space<vmem>>, vector<128x256xbf16>
    %cst = arith.constant dense<0.000000e+00> : vector<16x256xf32>
    %6 = tpu.matmul %4, %5, %cst {dimension_numbers = #tpu.dot_dimension_numbers<[1], [0], [0], [1], [0, 0, 1, 1], [], []>} : vector<16x128xbf16>, vector<128x256xbf16>, vector<16x256xf32> -> vector<16x256xf32>
    %7 = arith.addf %3, %6 : vector<16x256xf32>
    %c0_6 = arith.constant 0 : index
    %c0_7 = arith.constant 0 : index
    %8 = vector.load %arg7[%c0_6, %c0_7] : memref<16x256xf32, #tpu.memory_space<vmem>>, vector<16x256xf32>
    tpu.vector_store %arg7[%c0_6, %c0_7], %7 {strides = array<i32>} : memref<16x256xf32, #tpu.memory_space<vmem>>, vector<16x256xf32>,
    %c0_i32_8 = arith.constant 0 : i32
    %9 = arith.cmpi eq, %arg2, %c0_i32_8 : i32
    %10 = arith.extui %9 : i1 to i32
    %c0_i32_9 = arith.constant 0 : i32
    %11 = arith.cmpi ne, %10, %c0_i32_9 : i32
    scf.if %11 {
      %c0_10 = arith.constant 0 : index
      %c0_11 = arith.constant 0 : index
      %12 = vector.load %arg7[%c0_10, %c0_11] : memref<16x256xf32, #tpu.memory_space<vmem>>, vector<16x256xf32>
      %c0_12 = arith.constant 0 : index
      %c0_13 = arith.constant 0 : index
      %13 = vector.load %arg5[%c0_12, %c0_13] : memref<1x256xf32, #tpu.memory_space<vmem>>, vector<1x256xf32>
      %14 = vector.broadcast %13 : vector<1x256xf32> to vector<16x256xf32>
      %15 = arith.addf %12, %14 : vector<16x256xf32>
      %16 = vector.extract_strided_slice %15 {offsets = [0, 0], sizes = [16, 128], strides = [1, 1]} : vector<16x256xf32> to vector<16x128xf32>
      %17 = vector.extract_strided_slice %15 {offsets = [0, 128], sizes = [16, 128], strides = [1, 1]} : vector<16x256xf32> to vector<16x128xf32>
      %cst_14 = arith.constant 5.000000e-01 : f32
      %18 = vector.broadcast %cst_14 : f32 to vector<16x128xf32>
      %19 = arith.mulf %18, %17 : vector<16x128xf32>
      %cst_15 = arith.constant 0.707106769 : f32
      %20 = vector.broadcast %cst_15 : f32 to vector<16x128xf32>
      %21 = arith.mulf %17, %20 : vector<16x128xf32>
      %22 = math.erf %21 : vector<16x128xf32>
      %cst_16 = arith.constant 1.000000e+00 : f32
      %23 = vector.broadcast %cst_16 : f32 to vector<16x128xf32>
      %24 = arith.addf %23, %22 : vector<16x128xf32>
      %25 = arith.mulf %19, %24 : vector<16x128xf32>
      %26 = arith.mulf %16, %25 : vector<16x128xf32>
      %c0_17 = arith.constant 0 : index
      %c0_18 = arith.constant 0 : index
      %27 = vector.load %arg6[%c0_17, %c0_18] : memref<16x128xf32, #tpu.memory_space<vmem>>, vector<16x128xf32>
      tpu.vector_store %arg6[%c0_17, %c0_18], %26 {strides = array<i32>} : memref<16x128xf32, #tpu.memory_space<vmem>>, vector<16x128xf32>,
    } else {
    }
    return
  }
  func.func @transform_0(%arg0: i32, %arg1: i32, %arg2: i32) -> (i32, i32) {
    %c0_i32 = arith.constant 0 : i32
    return %arg0, %arg2 : i32, i32
  }
  func.func @transform_1(%arg0: i32, %arg1: i32, %arg2: i32) -> (i32, i32) {
    %c0_i32 = arith.constant 0 : i32
    return %arg2, %arg1 : i32, i32
  }
  func.func @transform_2(%arg0: i32, %arg1: i32, %arg2: i32) -> (i32, i32) {
    %c0_i32 = arith.constant 0 : i32
    %c0_i32_0 = arith.constant 0 : i32
    return %c0_i32, %arg1 : i32, i32
  }
  func.func @transform_3(%arg0: i32, %arg1: i32, %arg2: i32) -> (i32, i32) {
    %c0_i32 = arith.constant 0 : i32
    return %arg0, %arg1 : i32, i32
  }
}

</mosaic_0001>

<bundles_post_ra>
// kernel: tpu_custom_call.1
= control target key start
LH: loop header
LB: loop body
LE: loop exit
PB: predicated region body
PF: predicated region fallthrough
CT: control target
= control target key end

     0   :  { %8 = vsyncpa [#allocation4], 0  ;;  %s465_s0 = inlined_call_operand.hbm [shape: bf16[16,128], index: 0, kind: input, shape index: {}]   ;;  %s466_s1 = inlined_call_operand.hbm [shape: bf16[128,256], index: 1, kind: input, shape index: {}]   ;;  %s467_s2 = inlined_call_operand.vmem [shape: f32[1,256], index: 2, kind: input, shape index: {}]   ;;  %s468_s3 = inlined_call_operand.hbm [shape: f32[16,128], index: 3, kind: output, shape index: {}]  }
   0x1   :  { %9 = vsyncpa [#allocation7], 0 }
   0x2   :  { %10 = vsyncpa [#allocation5], 0  ;;  %s392_s12 = smov [#allocation3]   ;;  %s320_s16 = scalar_lea.hbm %s465_s0, 128 }
   0x3   :  { %s16_s13 = sshll.u32 %s392_s12, 4  ;;  %p321_p0 = scmp.ne.s32.totalorder %s465_s0, %s320_s16  ;;  %s17_s13 = int_to_ptr.vmem [resolvable:$true] %s16_s13 }
   0x4   :  { %p324_p1 = scmp.lt.u32.totalorder %s320_s16, %s465_s0 }
   0x6   :  { %p326_p2 = pnand %p324_p1, %p321_p0 }
   0x8   :  { %329 = shalt.err (!%p326_p2)
}
   0x9   :  { %s330_s21 = scalar_lea.vmem %s17_s13, 128  ;;  %p335_p4 = scmp.lt.s32.totalorder %s17_s13, %s17_s13 }
   0xa   :  { %p331_p3 = scmp.ne.s32.totalorder %s17_s13, %s330_s21  ;;  %p336_p5 = scmp.lt.s32.totalorder %s330_s21, %s330_s21 }
   0xc   :  { %p337_p6 = por %p336_p5, %p335_p4 }
   0xe   :  { %p338_p7 = pnand %p337_p6, %p331_p3 }
  0x10   :  { %341 = shalt.err (!%p338_p7)
}
  0x11   :  { %s393_s22 = smov 64   ;;  %s394_s23 = smov 4  }
  0x12   :  { %22 = dma.hbm_to_vmem [thread:$0]  %s465_s0, 128, %s17_s13, [#allocation4], %s393_s22, %s393_s22, %s394_s23  }
  0x13   :  { %s395_s26 = smov [#allocation6]   ;;  %s342_s30 = scalar_lea.hbm %s466_s1, 2048 }
  0x14   :  { %s28_s27 = sshll.u32 %s395_s26, 4  ;;  %p343_p8 = scmp.ne.s32.totalorder %s466_s1, %s342_s30  ;;  %s29_s27 = int_to_ptr.vmem [resolvable:$true] %s28_s27 }
  0x15   :  { %p346_p9 = scmp.lt.u32.totalorder %s342_s30, %s466_s1 }
  0x17   :  { %p348_p10 = pnand %p346_p9, %p343_p8 }
  0x19   :  { %351 = shalt.err (!%p348_p10)
}
  0x1a   :  { %s352_s8 = scalar_lea.vmem %s29_s27, 2048  ;;  %p357_p12 = scmp.lt.s32.totalorder %s29_s27, %s29_s27 }
  0x1b   :  { %p353_p11 = scmp.ne.s32.totalorder %s29_s27, %s352_s8  ;;  %p358_p13 = scmp.lt.s32.totalorder %s352_s8, %s352_s8 }
  0x1d   :  { %p359_p0 = por %p358_p13, %p357_p12 }
  0x1f   :  { %p360_p1 = pnand %p359_p0, %p353_p11 }
  0x21   :  { %363 = shalt.err (!%p360_p1)
}
  0x22   :  { %s396_s0 = smov 128   ;;  %s397_s9 = smov 8  }
  0x23   :  { %34 = dma.hbm_to_vmem [thread:$0]  %s466_s1, 2048, %s29_s27, [#allocation7], %s396_s0, %s396_s0, %s397_s9  }
  0x24   :  { %386 = dma.done.wait [#allocation4], 128  }
  0x25   :  { %387 = vsyncadd [#allocation4], 4294967168 }
  0x26   :  { %388 = dma.done.wait [#allocation7], 2048  }
  0x27   :  { %389 = vsyncadd [#allocation7], 4294965248  ;;  %v398_v0 = vmov 0   ;;  %v291_v1 = vld [vmem:[#allocation6 + $0x4] ss:$8 sps:$4 sm:$0xff]   ;;  %v315_v17 = vld [vmem:[#allocation3] sm:$0xff]   ;;  %v220_v18 = vlaneseq }
  0x28   :  { %192 = vmatprep.mubr.bf16.mxu0 %v398_v0  ;;  %v293_v2 = vld [vmem:[#allocation6] ss:$8 sps:$4 sm:$0xff]   ;;  %160 = vmatprep.subr.bf16.mxu0 %v291_v1  ;;  %v294_v3 = vld [vmem:[#allocation6 + $0x14] ss:$8 sps:$4 sm:$0xff]   ;;  %v296_v4 = vld [vmem:[#allocation6 + $0x10] ss:$8 sps:$4 sm:$0xff]  }
  0x29   :  { %161 = vmatpush1.bf16.msra.mxu0 %v293_v2  ;;  %v297_v5 = vld [vmem:[#allocation6 + $0x24] ss:$8 sps:$4 sm:$0xff]   ;;  %v299_v6 = vld [vmem:[#allocation6 + $0x20] ss:$8 sps:$4 sm:$0xff]   ;;  %v300_v7 = vld [vmem:[#allocation6 + $0x34] ss:$8 sps:$4 sm:$0xff]  }
  0x2a   :  { %162 = vmatprep.subr.bf16.mxu0 %v294_v3  ;;  %v302_v8 = vld [vmem:[#allocation6 + $0x30] ss:$8 sps:$4 sm:$0xff]   ;;  %v303_v9 = vld [vmem:[#allocation6 + $0x44] ss:$8 sps:$4 sm:$0xff]   ;;  %v305_v10 = vld [vmem:[#allocation6 + $0x40] ss:$8 sps:$4 sm:$0xff]  }
  0x2b   :  { %v306_v11 = vld [vmem:[#allocation6 + $0x54] ss:$8 sps:$4 sm:$0xff]   ;;  %v308_v12 = vld [vmem:[#allocation6 + $0x50] ss:$8 sps:$4 sm:$0xff]   ;;  %v309_v13 = vld [vmem:[#allocation6 + $0x64] ss:$8 sps:$4 sm:$0xff]  }
  0x2c   :  { %v311_v14 = vld [vmem:[#allocation6 + $0x60] ss:$8 sps:$4 sm:$0xff]   ;;  %v312_v15 = vld [vmem:[#allocation6 + $0x74] ss:$8 sps:$4 sm:$0xff]   ;;  %v314_v16 = vld [vmem:[#allocation6 + $0x70] ss:$8 sps:$4 sm:$0xff]  }
  0x2d   :  { %163 = vmatpush1.bf16.msra.mxu0 %v296_v4  ;;  %v221_v19 = vshrl.u32 %v220_v18, 7  ;;  %v218_v21 = vld [vmem:[%s467_s2] sm:$0x3]  ;;  %s399_s2 = smov [#allocation8]  }
  0x2e   :  { %164 = vmatprep.subr.bf16.mxu0 %v297_v5  ;;  %s253_s13 = sshll.u32 %s399_s2, 4  ;;  %s254_s13 = int_to_ptr.vmem [resolvable:$true] %s253_s13 }
  0x2f   :  { %v226_v20 = vsub.s32 1, %v221_v19  ;;  %v222_v31 = vsub.s32 0, %v221_v19  ;;  %s364_s14 = scalar_lea.vmem %s254_s13, 256  ;;  %p369_p3 = scmp.lt.s32.totalorder %s254_s13, %s254_s13 }
  0x30   :  { %p365_p2 = scmp.ne.s32.totalorder %s254_s13, %s364_s14  ;;  %p370_p4 = scmp.lt.s32.totalorder %s364_s14, %s364_s14 }
  0x31   :  { %165 = vmatpush1.bf16.msra.mxu0 %v299_v6  ;;  %v227_v22 = vrot.slane %v218_v21, %v226_v20  ;;  %v223_v32 = vrot.slane %v218_v21, %v222_v31 }
  0x32   :  { %166 = vmatprep.subr.bf16.mxu0 %v300_v7  ;;  %p371_p5 = por %p370_p4, %p369_p3 }
  0x34   :  { %p372_p6 = pnand %p371_p5, %p365_p2 }
  0x35   :  { %167 = vmatpush1.bf16.msra.mxu0 %v302_v8 }
  0x36   :  { %168 = vmatprep.subr.bf16.mxu0 %v303_v9 }
  0x39   :  { %169 = vmatpush1.bf16.msra.mxu0 %v305_v10 }
  0x3a   :  { %170 = vmatprep.subr.bf16.mxu0 %v306_v11 }
  0x3d   :  { %171 = vmatpush1.bf16.msra.mxu0 %v308_v12 }
  0x3e   :  { %172 = vmatprep.subr.bf16.mxu0 %v309_v13 }
  0x41   :  { %173 = vmatpush1.bf16.msra.mxu0 %v311_v14 }
  0x42   :  { %174 = vmatprep.subr.bf16.mxu0 %v312_v15 }
  0x45   :  { %175 = vmatpush1.bf16.msra.mxu0 %v314_v16 }
  0x48   :  { %193 = vmatmul.mubr.bf16.vlgmr.msra.gmra.mrb[0].mxu0 %v315_v17 }
 0x11b   :  { %v194_v23 = vpop.f32.mrb[0].mxu0 }
 0x11c   :  { %v196_v24 = vpop.f32.mrb[1].mxu0  ;;  %v230_v37 = vadd.f32 %v223_v32, %v194_v23 }
 0x11d   :  { %v231_v25 = vadd.f32 %v227_v22, %v196_v24  ;;  %v198_v26 = vpop.f32.mrb[2].mxu0 }
 0x11e   :  { %v200_v27 = vpop.f32.mrb[3].mxu0  ;;  %v232_v41 = vadd.f32 %v223_v32, %v198_v26 }
 0x11f   :  { %v236_v28 = vmul.f32 0.70710677, %v231_v25  ;;  %v233_v29 = vadd.f32 %v227_v22, %v200_v27  ;;  %v234_v34 = vmul.f32 0.5, %v231_v25 }
 0x121   :  { %316 = verf.f32 %v236_v28  ;;  %v237_v30 = vmul.f32 0.70710677, %v233_v29  ;;  %v235_v39 = vmul.f32 0.5, %v233_v29 }
 0x123   :  { %318 = verf.f32 %v237_v30 }
 0x12b   :  { %v317_v33 = vpop.eup %316 }
 0x12c   :  { %v240_v35 = vadd.f32 1.0, %v317_v33 }
 0x12d   :  { %v319_v36 = vpop.eup %318 }
 0x12e   :  { %v242_v38 = vmul.f32 %v240_v35, %v234_v34  ;;  %v241_v40 = vadd.f32 1.0, %v319_v36 }
 0x130   :  { %v243_v42 = vmul.f32 %v241_v40, %v235_v39  ;;  %v244_v43 = vmul.f32 %v242_v38, %v230_v37 }
 0x132   :  { %v245_v44 = vmul.f32 %v243_v42, %v232_v41  ;;  %246 = vst [vmem:[#allocation8] sm:$0xff] %v244_v43 }
 0x134   :  { %247 = vst [vmem:[#allocation8 + $0x8] sm:$0xff] %v245_v44 }
 0x135   :  { %375 = shalt.err (!%p372_p6)
}
 0x136   :  { %s376_s17 = scalar_lea.hbm %s468_s3, 256 }
 0x137   :  { %p377_p7 = scmp.ne.s32.totalorder %s468_s3, %s376_s17  ;;  %p380_p8 = scmp.lt.u32.totalorder %s376_s17, %s468_s3 }
 0x139   :  { %p382_p9 = pnand %p380_p8, %p377_p7 }
 0x13b   :  { %385 = shalt.err (!%p382_p9)
}
 0x13c   :  { %259 = dma.vmem_to_hbm [thread:$0]  %s254_s13, 256, %s468_s3, [#allocation5], %s396_s0, %s396_s0, %s397_s9  }
 0x13d   :  { %390 = dma.done.wait [#allocation5], 256  }
 0x13e   :  { %391 = vsyncadd [#allocation5], 4294967040 }
 0x13f   :  { %263 = vsyncpa [#allocation4], 1 }
 0x140   :  { %264 = vsyncpa [#allocation7], 1 }
 0x141   :  { %265 = vsyncpa [#allocation5], 1 }

</bundles_post_ra>
